<compile_context>
chip_gen: v6e
topology: v6e:2x2x1
jax: 0.10.0
libtpu: 0.0.40
codegen_flags: <defaults>
</compile_context>

<pallas_src>
import functools
import math

import jax
import jax.numpy as jnp
from jax.experimental import pallas as pl
from jax.experimental.pallas import tpu as pltpu

LANE = 128      # TPU lane width
SUBLANE = 8     # TPU sublane width (f32)


def _round_up(n, m):
    return ((n + m - 1) // m) * m


def actor_kernel(x_ref, w1_ref, w2_ref, w3_ref, vec_ref, o_ref, *,
                 hidden, ph, pa, eps=1e-5):
    """Fused MLP: 3 MXU matmuls + 2 masked-free LayerNorms + relu + tanh."""
    f32 = jnp.float32
    cdt = x_ref.dtype                      # matmul input dtype (f32 or bf16)

    # Packed per-feature vectors (single DMA): rows 0..6 of an (8, LANE*) buf.
    b1 = vec_ref[0:1, :ph]
    g1 = vec_ref[1:2, :ph]
    be1 = vec_ref[2:3, :ph]
    b2 = vec_ref[3:4, :ph]
    g2 = vec_ref[4:5, :ph]
    be2 = vec_ref[5:6, :ph]
    b3 = vec_ref[6:7, :pa]

    inv_n = 1.0 / float(hidden)

    def layernorm(h, gamma, beta):
        # Padded lanes of h are EXACT zeros (zero-padded weight cols / biases),
        # so sum(h) / sum(h*h) already cover only the real `hidden` features.
        # One-pass variance E[h^2] - mu^2 — well conditioned for this init and
        # saves the (h - mu) * mask pre-pass on the binding VALU slot.
        mu = jnp.sum(h, axis=-1, keepdims=True) * inv_n
        var = jnp.sum(h * h, axis=-1, keepdims=True) * inv_n - mu * mu
        # gamma/beta are zero on padded lanes -> padded outputs stay exactly 0.
        return (h - mu) * jax.lax.rsqrt(var + eps) * gamma + beta

    x = x_ref[...]

    # ---- linear1 -> LayerNorm -> ReLU (LN / activation math in f32) ----
    h = jnp.dot(x, w1_ref[...], preferred_element_type=f32) + b1
    h = jnp.maximum(layernorm(h, g1, be1), 0.0)

    # ---- linear2 -> LayerNorm2 -> ReLU ----
    h = jnp.dot(h.astype(cdt), w2_ref[...], preferred_element_type=f32) + b2
    h = jnp.maximum(layernorm(h, g2, be2), 0.0)

    # ---- acts -> tanh (padded action columns are exactly 0, sliced outside)
    a = jnp.dot(h.astype(cdt), w3_ref[...], preferred_element_type=f32) + b3
    o_ref[...] = jnp.tanh(a).astype(o_ref.dtype)


def pack_actor_params(params):
    """Pad weights once (hidden/action dims to 128 lanes, input dim only to the
    sublane), pack all 1-D params into one (8, L) buffer, and cache both f32
    and bf16 weight copies so no per-call casts are needed."""
    (w1, b1, g1, be1, w2, b2, g2, be2, w3, b3) = params
    In, H = w1.shape
    A = w3.shape[1]
    Pn = _round_up(In, SUBLANE)            # NOT lane-padded: cuts x DMA ~8x
    Ph = _round_up(H, LANE)
    Pa = _round_up(A, LANE)
    Lv = max(Ph, Pa)

    def pad2(w, r, c):
        return jnp.zeros((r, c), jnp.float32).at[:w.shape[0], :w.shape[1]].set(
            w.astype(jnp.float32))

    w1p = pad2(w1, Pn, Ph)
    w2p = pad2(w2, Ph, Ph)
    w3p = pad2(w3, Ph, Pa)

    vec = jnp.zeros((8, Lv), jnp.float32)

    def setrow(buf, i, v):
        v = jnp.asarray(v, jnp.float32).reshape(-1)
        return buf.at[i, :v.shape[0]].set(v)

    vec = setrow(vec, 0, b1)
    vec = setrow(vec, 1, g1)
    vec = setrow(vec, 2, be1)
    vec = setrow(vec, 3, b2)
    vec = setrow(vec, 4, g2)
    vec = setrow(vec, 5, be2)
    vec = setrow(vec, 6, b3)

    dims = dict(input=In, hidden=H, action=A, pn=Pn, ph=Ph, pa=Pa, lv=Lv)
    return dict(
        w_f32=(w1p, w2p, w3p),
        w_bf16=tuple(w.astype(jnp.bfloat16) for w in (w1p, w2p, w3p)),
        vec=vec,                           # LayerNorm / bias params stay f32
        dims=dims,
    )


def actor_forward(x, packed, *, use_bf16=False, out_dtype=jnp.float32,
                  block_b=512, num_cores=2):
    """Actor forward for a batch of observations x: (B, input_size)."""
    dims = packed["dims"]
    In, H, A = dims["input"], dims["hidden"], dims["action"]
    Pn, Ph, Pa, Lv = dims["pn"], dims["ph"], dims["pa"], dims["lv"]

    out_dtype = jnp.dtype(out_dtype)
    mm_dtype = jnp.bfloat16 if use_bf16 else jnp.float32
    bf16_any = use_bf16 or out_dtype == jnp.dtype(jnp.bfloat16)
    align = 16 if bf16_any else SUBLANE    # bf16 packs 2 rows / sublane

    B = x.shape[0]
    # Balanced batch tiling: tiles capped at ~block_b rows for DMA efficiency
    # (v5e/v6e), and >= num_cores tiles when the batch is big enough so v7x's
    # two TensorCores get (near-)equal work instead of one 256-row + one
    # mostly-padding tile.
    nb = pl.cdiv(B, block_b)
    if B >= num_cores * 2 * align:
        nb = max(nb, num_cores)
    nb = max(nb, 1)
    TB = _round_up(pl.cdiv(B, nb), align)
    nb = pl.cdiv(B, TB)
    Bp = nb * TB

    w1, w2, w3 = packed["w_bf16"] if use_bf16 else packed["w_f32"]
    vec = packed["vec"]
    xp = jnp.zeros((Bp, Pn), mm_dtype).at[:B, :In].set(x.astype(mm_dtype))

    # ---- VMEM / buffering heuristics (only kick in for large hidden) ----
    w_itemsize = 2 if use_bf16 else 4
    w_elems = Pn * Ph + Ph * Ph + Ph * Pa
    # Double-buffered resident weights only matter when they get big (v7x has
    # 32 MiB scoped / 64 MiB physical VMEM); single-buffer them then.
    single_buffer_w = (2 * w_elems * w_itemsize) > (8 << 20)
    w_buffers = 1 if single_buffer_w else 2
    vmem_est = (w_buffers * w_elems * w_itemsize          # resident weights
                + 2 * 8 * Lv * 4                          # packed vec buffer
                + 2 * TB * Pn * w_itemsize                # streamed x tiles
                + 2 * TB * Pa * out_dtype.itemsize        # streamed out tiles
                + (2 << 20))                              # slack
    vmem_limit = None
    if vmem_est > (16 << 20):              # v5e scoped-VMEM default
        vmem_limit = min(_round_up(vmem_est, 1 << 20) + (4 << 20), 100 << 20)

    def resident(shape):
        if single_buffer_w:
            return pl.BlockSpec(shape, lambda i: (0, 0),
                                pipeline_mode=pl.Buffered(1))
        return pl.BlockSpec(shape, lambda i: (0, 0))

    cost = pl.CostEstimate(
        flops=2 * Bp * w_elems,
        transcendentals=Bp * (Pa + 2),     # tanh per action lane + 2 rsqrt/row
        bytes_accessed=(Bp * Pn * w_itemsize + Bp * Pa * out_dtype.itemsize
                        + w_elems * w_itemsize + 8 * Lv * 4))

    kernel = functools.partial(actor_kernel, hidden=H, ph=Ph, pa=Pa)

    out = pl.pallas_call(
        kernel,
        out_shape=jax.ShapeDtypeStruct((Bp, Pa), out_dtype),
        grid=(nb,),
        in_specs=[
            pl.BlockSpec((TB, Pn), lambda i: (i, 0)),   # x: streamed per tile
            resident((Pn, Ph)),                          # w1: VMEM-resident
            resident((Ph, Ph)),                          # w2: VMEM-resident
            resident((Ph, Pa)),                          # w3: VMEM-resident
            resident((8, Lv)),                           # packed bias/LN params
        ],
        out_specs=pl.BlockSpec((TB, Pa), lambda i: (i, 0)),  # lane-dense store
        compiler_params=pltpu.CompilerParams(
            dimension_semantics=("parallel",),           # shards batch on v7x
            vmem_limit_bytes=vmem_limit),
        cost_estimate=cost,
    )(xp, w1, w2, w3, vec)

    return out[:B, :A]


def init_actor_params(key, input_size, hidden, action_size):
    """Deterministic init mirroring the PyTorch __init__ distributions."""
    ks = jax.random.split(key, 6)
    s = 1.0 / math.sqrt(input_size)

    # torch stores weight as (out, in); we store (in, out) => transpose.
    w1 = (2.0 * s * jax.random.uniform(ks[0], (hidden, input_size)) - s).T
    b1 = (2.0 * s * jax.random.uniform(ks[1], (hidden,)) - s)
    w2 = (2.0 * s * jax.random.uniform(ks[2], (hidden, hidden)) - s).T
    b2 = (2.0 * s * jax.random.uniform(ks[3], (hidden,)) - s)
    w3 = (0.006 * jax.random.uniform(ks[4], (action_size, hidden)) - 0.003).T
    b3 = (0.006 * jax.random.uniform(ks[5], (action_size,)) - 0.003)

    # LayerNorm affine params default to ones / zeros.
    g1 = jnp.ones((hidden,), jnp.float32)
    be1 = jnp.zeros((hidden,), jnp.float32)
    g2 = jnp.ones((hidden,), jnp.float32)
    be2 = jnp.zeros((hidden,), jnp.float32)

    to_f32 = lambda a: a.astype(jnp.float32)
    return tuple(map(to_f32, (w1, b1, g1, be1, w2, b2, g2, be2, w3, b3)))


def actor_ref(x, params):
    """Pure-JAX reference (unpadded) for correctness check."""
    (w1, b1, g1, be1, w2, b2, g2, be2, w3, b3) = params

    def ln(h, g, b, eps=1e-5):
        mu = jnp.mean(h, axis=-1, keepdims=True)
        var = jnp.mean((h - mu) * (h - mu), axis=-1, keepdims=True)
        return (h - mu) * jax.lax.rsqrt(var + eps) * g + b

    h = x @ w1 + b1
    h = jnp.maximum(ln(h, g1, be1), 0.0)
    h = h @ w2 + b2
    h = jnp.maximum(ln(h, g2, be2), 0.0)
    return jnp.tanh(h @ w3 + b3)


if __name__ == "__main__":
    INPUT_SIZE = 16      # observation dim
    HIDDEN = 32          # hiddenLayerSize
    ACTION_SIZE = 8      # actionSpace.shape[0]
    BATCH = 2

    key = jax.random.PRNGKey(0)
    k_x, k_p, k_xl = jax.random.split(key, 3)

    params = init_actor_params(k_p, INPUT_SIZE, HIDDEN, ACTION_SIZE)
    packed = pack_actor_params(params)      # pad + pack + cache bf16 once

    # Small batch (shapes the module implies).
    x = jax.random.normal(k_x, (BATCH, INPUT_SIZE), dtype=jnp.float32)
    out = jax.block_until_ready(actor_forward(x, packed))
    ref = actor_ref(x, params)
    assert out.shape == (BATCH, ACTION_SIZE), out.shape
    assert jnp.allclose(out, ref, atol=1e-5, rtol=1e-5)

    # Larger batch: exercises the balanced 2-tile batch grid and pipelining.
    xl = jax.random.normal(k_xl, (300, INPUT_SIZE), dtype=jnp.float32)
    outl = jax.block_until_ready(actor_forward(xl, packed))
    refl = actor_ref(xl, params)
    assert outl.shape == (300, ACTION_SIZE), outl.shape
    assert jnp.allclose(outl, refl, atol=1e-5, rtol=1e-5)

    # bf16 MXU fast path (v6e/v7x); LN/ReLU/tanh still f32, looser tolerance.
    outb = jax.block_until_ready(actor_forward(xl, packed, use_bf16=True))
    assert jnp.allclose(outb, refl, atol=5e-2, rtol=5e-2)

    # bf16 matmuls + bf16 output (halves out-slab writeback).
    outbb = jax.block_until_ready(
        actor_forward(xl, packed, use_bf16=True, out_dtype=jnp.bfloat16))
    assert outbb.dtype == jnp.bfloat16
    assert jnp.allclose(outbb.astype(jnp.float32), refl, atol=5e-2, rtol=5e-2)

    print("KERNEL_OK")
</pallas_src>

<mosaic_0001>
module attributes {stable_mosaic.version = 11 : i64} {
  func.func @actor_kernel(%arg0: i32, %arg1: memref<8x16xf32, #tpu.memory_space<vmem>>, %arg2: memref<16x128xf32, #tpu.memory_space<vmem>>, %arg3: memref<128x128xf32, #tpu.memory_space<vmem>>, %arg4: memref<128x128xf32, #tpu.memory_space<vmem>>, %arg5: memref<8x128xf32, #tpu.memory_space<vmem>>, %arg6: memref<8x128xf32, #tpu.memory_space<vmem>>) attributes {dimension_semantics = [#tpu.dimension_semantics<parallel>], iteration_bounds = array<i64: 1>, scalar_prefetch = 0 : i64, scratch_operands = 0 : i64, tpu.core_type = #tpu.core_type<tc>, window_params = [{transform_indices = @transform_0, window_bounds = array<i64: 8, 16>}, {pipeline_mode = #tpu.pipeline_mode<synchronous>, transform_indices = @transform_1, window_bounds = array<i64: 16, 128>}, {pipeline_mode = #tpu.pipeline_mode<synchronous>, transform_indices = @transform_2, window_bounds = array<i64: 128, 128>}, {pipeline_mode = #tpu.pipeline_mode<synchronous>, transform_indices = @transform_3, window_bounds = array<i64: 128, 128>}, {pipeline_mode = #tpu.pipeline_mode<synchronous>, transform_indices = @transform_4, window_bounds = array<i64: 8, 128>}, {transform_indices = @transform_5, window_bounds = array<i64: 8, 128>}]} {
    %c0 = arith.constant 0 : index
    %c0_0 = arith.constant 0 : index
    %0 = vector.load %arg5[%c0, %c0_0] : memref<8x128xf32, #tpu.memory_space<vmem>>, vector<1x128xf32>
    %c1 = arith.constant 1 : index
    %c0_1 = arith.constant 0 : index
    %1 = vector.load %arg5[%c1, %c0_1] : memref<8x128xf32, #tpu.memory_space<vmem>>, vector<1x128xf32>
    %c2 = arith.constant 2 : index
    %c0_2 = arith.constant 0 : index
    %2 = vector.load %arg5[%c2, %c0_2] : memref<8x128xf32, #tpu.memory_space<vmem>>, vector<1x128xf32>
    %c3 = arith.constant 3 : index
    %c0_3 = arith.constant 0 : index
    %3 = vector.load %arg5[%c3, %c0_3] : memref<8x128xf32, #tpu.memory_space<vmem>>, vector<1x128xf32>
    %c4 = arith.constant 4 : index
    %c0_4 = arith.constant 0 : index
    %4 = vector.load %arg5[%c4, %c0_4] : memref<8x128xf32, #tpu.memory_space<vmem>>, vector<1x128xf32>
    %c5 = arith.constant 5 : index
    %c0_5 = arith.constant 0 : index
    %5 = vector.load %arg5[%c5, %c0_5] : memref<8x128xf32, #tpu.memory_space<vmem>>, vector<1x128xf32>
    %c6 = arith.constant 6 : index
    %c0_6 = arith.constant 0 : index
    %6 = vector.load %arg5[%c6, %c0_6] : memref<8x128xf32, #tpu.memory_space<vmem>>, vector<1x128xf32>
    %c0_7 = arith.constant 0 : index
    %c0_8 = arith.constant 0 : index
    %7 = vector.load %arg1[%c0_7, %c0_8] : memref<8x16xf32, #tpu.memory_space<vmem>>, vector<8x16xf32>
    %c0_9 = arith.constant 0 : index
    %c0_10 = arith.constant 0 : index
    %8 = vector.load %arg2[%c0_9, %c0_10] : memref<16x128xf32, #tpu.memory_space<vmem>>, vector<16x128xf32>
    %cst = arith.constant dense<0.000000e+00> : vector<8x128xf32>
    %9 = tpu.matmul %7, %8, %cst {dimension_numbers = #tpu.dot_dimension_numbers<[1], [0], [0], [1], [0, 0, 1, 1], [], []>} : vector<8x16xf32>, vector<16x128xf32>, vector<8x128xf32> -> vector<8x128xf32>
    %10 = vector.broadcast %0 : vector<1x128xf32> to vector<8x128xf32>
    %11 = arith.addf %9, %10 : vector<8x128xf32>
    %cst_11 = arith.constant dense<0.000000e+00> : vector<8xf32>
    %12 = vector.multi_reduction <add>, %11, %cst_11 [1] : vector<8x128xf32> to vector<8xf32>
    %13 = vector.shape_cast %12 : vector<8xf32> to vector<8x1xf32>
    %cst_12 = arith.constant 3.125000e-02 : f32
    %14 = vector.broadcast %cst_12 : f32 to vector<8x1xf32>
    %15 = arith.mulf %13, %14 : vector<8x1xf32>
    %16 = arith.mulf %11, %11 : vector<8x128xf32>
    %cst_13 = arith.constant dense<0.000000e+00> : vector<8xf32>
    %17 = vector.multi_reduction <add>, %16, %cst_13 [1] : vector<8x128xf32> to vector<8xf32>
    %18 = vector.shape_cast %17 : vector<8xf32> to vector<8x1xf32>
    %cst_14 = arith.constant 3.125000e-02 : f32
    %19 = vector.broadcast %cst_14 : f32 to vector<8x1xf32>
    %20 = arith.mulf %18, %19 : vector<8x1xf32>
    %21 = arith.mulf %15, %15 : vector<8x1xf32>
    %22 = arith.subf %20, %21 : vector<8x1xf32>
    %23 = vector.broadcast %15 : vector<8x1xf32> to vector<8x128xf32>
    %24 = arith.subf %11, %23 : vector<8x128xf32>
    %cst_15 = arith.constant 9.99999974E-6 : f32
    %25 = vector.broadcast %cst_15 : f32 to vector<8x1xf32>
    %26 = arith.addf %22, %25 : vector<8x1xf32>
    %27 = math.rsqrt %26 : vector<8x1xf32>
    %28 = vector.broadcast %27 : vector<8x1xf32> to vector<8x128xf32>
    %29 = arith.mulf %24, %28 : vector<8x128xf32>
    %30 = vector.broadcast %1 : vector<1x128xf32> to vector<8x128xf32>
    %31 = arith.mulf %29, %30 : vector<8x128xf32>
    %32 = vector.broadcast %2 : vector<1x128xf32> to vector<8x128xf32>
    %33 = arith.addf %31, %32 : vector<8x128xf32>
    %cst_16 = arith.constant 0.000000e+00 : f32
    %34 = vector.broadcast %cst_16 : f32 to vector<8x128xf32>
    %35 = arith.maximumf %33, %34 : vector<8x128xf32>
    %c0_17 = arith.constant 0 : index
    %c0_18 = arith.constant 0 : index
    %36 = vector.load %arg3[%c0_17, %c0_18] : memref<128x128xf32, #tpu.memory_space<vmem>>, vector<128x128xf32>
    %cst_19 = arith.constant dense<0.000000e+00> : vector<8x128xf32>
    %37 = tpu.matmul %35, %36, %cst_19 {dimension_numbers = #tpu.dot_dimension_numbers<[1], [0], [0], [1], [0, 0, 1, 1], [], []>} : vector<8x128xf32>, vector<128x128xf32>, vector<8x128xf32> -> vector<8x128xf32>
    %38 = vector.broadcast %3 : vector<1x128xf32> to vector<8x128xf32>
    %39 = arith.addf %37, %38 : vector<8x128xf32>
    %cst_20 = arith.constant dense<0.000000e+00> : vector<8xf32>
    %40 = vector.multi_reduction <add>, %39, %cst_20 [1] : vector<8x128xf32> to vector<8xf32>
    %41 = vector.shape_cast %40 : vector<8xf32> to vector<8x1xf32>
    %cst_21 = arith.constant 3.125000e-02 : f32
    %42 = vector.broadcast %cst_21 : f32 to vector<8x1xf32>
    %43 = arith.mulf %41, %42 : vector<8x1xf32>
    %44 = arith.mulf %39, %39 : vector<8x128xf32>
    %cst_22 = arith.constant dense<0.000000e+00> : vector<8xf32>
    %45 = vector.multi_reduction <add>, %44, %cst_22 [1] : vector<8x128xf32> to vector<8xf32>
    %46 = vector.shape_cast %45 : vector<8xf32> to vector<8x1xf32>
    %cst_23 = arith.constant 3.125000e-02 : f32
    %47 = vector.broadcast %cst_23 : f32 to vector<8x1xf32>
    %48 = arith.mulf %46, %47 : vector<8x1xf32>
    %49 = arith.mulf %43, %43 : vector<8x1xf32>
    %50 = arith.subf %48, %49 : vector<8x1xf32>
    %51 = vector.broadcast %43 : vector<8x1xf32> to vector<8x128xf32>
    %52 = arith.subf %39, %51 : vector<8x128xf32>
    %cst_24 = arith.constant 9.99999974E-6 : f32
    %53 = vector.broadcast %cst_24 : f32 to vector<8x1xf32>
    %54 = arith.addf %50, %53 : vector<8x1xf32>
    %55 = math.rsqrt %54 : vector<8x1xf32>
    %56 = vector.broadcast %55 : vector<8x1xf32> to vector<8x128xf32>
    %57 = arith.mulf %52, %56 : vector<8x128xf32>
    %58 = vector.broadcast %4 : vector<1x128xf32> to vector<8x128xf32>
    %59 = arith.mulf %57, %58 : vector<8x128xf32>
    %60 = vector.broadcast %5 : vector<1x128xf32> to vector<8x128xf32>
    %61 = arith.addf %59, %60 : vector<8x128xf32>
    %cst_25 = arith.constant 0.000000e+00 : f32
    %62 = vector.broadcast %cst_25 : f32 to vector<8x128xf32>
    %63 = arith.maximumf %61, %62 : vector<8x128xf32>
    %c0_26 = arith.constant 0 : index
    %c0_27 = arith.constant 0 : index
    %64 = vector.load %arg4[%c0_26, %c0_27] : memref<128x128xf32, #tpu.memory_space<vmem>>, vector<128x128xf32>
    %cst_28 = arith.constant dense<0.000000e+00> : vector<8x128xf32>
    %65 = tpu.matmul %63, %64, %cst_28 {dimension_numbers = #tpu.dot_dimension_numbers<[1], [0], [0], [1], [0, 0, 1, 1], [], []>} : vector<8x128xf32>, vector<128x128xf32>, vector<8x128xf32> -> vector<8x128xf32>
    %66 = vector.broadcast %6 : vector<1x128xf32> to vector<8x128xf32>
    %67 = arith.addf %65, %66 : vector<8x128xf32>
    %68 = math.tanh %67 : vector<8x128xf32>
    %c0_29 = arith.constant 0 : index
    %c0_30 = arith.constant 0 : index
    %69 = vector.load %arg6[%c0_29, %c0_30] : memref<8x128xf32, #tpu.memory_space<vmem>>, vector<8x128xf32>
    tpu.vector_store %arg6[%c0_29, %c0_30], %68 {strides = array<i32>} : memref<8x128xf32, #tpu.memory_space<vmem>>, vector<8x128xf32>,
    return
  }
  func.func @transform_0(%arg0: i32) -> (i32, i32) {
    %c0_i32 = arith.constant 0 : i32
    %c0_i32_0 = arith.constant 0 : i32
    return %arg0, %c0_i32 : i32, i32
  }
  func.func @transform_1(%arg0: i32) -> (i32, i32) {
    %c0_i32 = arith.constant 0 : i32
    %c0_i32_0 = arith.constant 0 : i32
    %c0_i32_1 = arith.constant 0 : i32
    return %c0_i32, %c0_i32_0 : i32, i32
  }
  func.func @transform_2(%arg0: i32) -> (i32, i32) {
    %c0_i32 = arith.constant 0 : i32
    %c0_i32_0 = arith.constant 0 : i32
    %c0_i32_1 = arith.constant 0 : i32
    return %c0_i32, %c0_i32_0 : i32, i32
  }
  func.func @transform_3(%arg0: i32) -> (i32, i32) {
    %c0_i32 = arith.constant 0 : i32
    %c0_i32_0 = arith.constant 0 : i32
    %c0_i32_1 = arith.constant 0 : i32
    return %c0_i32, %c0_i32_0 : i32, i32
  }
  func.func @transform_4(%arg0: i32) -> (i32, i32) {
    %c0_i32 = arith.constant 0 : i32
    %c0_i32_0 = arith.constant 0 : i32
    %c0_i32_1 = arith.constant 0 : i32
    return %c0_i32, %c0_i32_0 : i32, i32
  }
  func.func @transform_5(%arg0: i32) -> (i32, i32) {
    %c0_i32 = arith.constant 0 : i32
    %c0_i32_0 = arith.constant 0 : i32
    return %arg0, %c0_i32 : i32, i32
  }
}

</mosaic_0001>

<bundles_post_ra>
// kernel: tpu_custom_call.1
= control target key start
LH: loop header
LB: loop body
LE: loop exit
PB: predicated region body
PF: predicated region fallthrough
CT: control target
= control target key end

     0   :  { %10 = vsyncpa [#allocation3], 0  ;;  %s802_s0 = inlined_call_operand.hbm [shape: f32[8,16], index: 0, kind: input, shape index: {}]   ;;  %s803_s1 = inlined_call_operand.hbm [shape: f32[16,128], index: 1, kind: input, shape index: {}]   ;;  %s804_s2 = inlined_call_operand.hbm [shape: f32[128,128], index: 2, kind: input, shape index: {}]   ;;  %s805_s3 = inlined_call_operand.hbm [shape: f32[128,128], index: 3, kind: input, shape index: {}]   ;;  %s806_s4 = inlined_call_operand.hbm [shape: f32[8,128], index: 4, kind: input, shape index: {}]   ;;  %s807_s5 = inlined_call_operand.hbm [shape: f32[8,128], index: 5, kind: output, shape index: {}]  }
   0x1   :  { %11 = vsyncpa [#allocation6], 0 }
   0x2   :  { %12 = vsyncpa [#allocation9], 0 }
   0x3   :  { %13 = vsyncpa [#allocation4], 0  ;;  %s686_s18 = smov [#allocation5]  }
   0x4   :  { %s29_s19 = sshll.u32 %s686_s18, 4  ;;  %s30_s19 = int_to_ptr.vmem [resolvable:$true] %s29_s19 }
   0x5   :  { %s566_s20 = scalar_lea.vmem %s30_s19, 256  ;;  %p571_p1 = scmp.lt.s32.totalorder %s30_s19, %s30_s19 }
   0x6   :  { %p567_p0 = scmp.ne.s32.totalorder %s30_s19, %s566_s20  ;;  %p572_p2 = scmp.lt.s32.totalorder %s566_s20, %s566_s20 }
   0x8   :  { %p573_p3 = por %p572_p2, %p571_p1 }
   0xa   :  { %p574_p4 = pnand %p573_p3, %p567_p0 }
   0xc   :  { %577 = shalt.err (!%p574_p4)
}
   0xd   :  { %s687_s21 = smov 128   ;;  %s688_s22 = smov 8  }
   0xe   :  { %35 = dma.hbm_to_vmem [thread:$0]  %s803_s1, 256, %s30_s19, [#allocation6], %s687_s21, %s687_s21, %s688_s22  }
   0xf   :  { %s689_s25 = smov [#allocation8]   ;;  %s690_s27 = smov [#allocation2]  }
  0x10   :  { %s53_s26 = sshll.u32 %s689_s25, 4  ;;  %s20_s28 = sshll.u32 %s690_s27, 4  ;;  %s54_s26 = int_to_ptr.vmem [resolvable:$true] %s53_s26  ;;  %s21_s28 = int_to_ptr.vmem [resolvable:$true] %s20_s28 }
  0x11   :  { %s586_s29 = scalar_lea.vmem %s54_s26, 2048  ;;  %p591_p6 = scmp.lt.s32.totalorder %s54_s26, %s54_s26 }
  0x12   :  { %p587_p5 = scmp.ne.s32.totalorder %s54_s26, %s586_s29  ;;  %p592_p7 = scmp.lt.s32.totalorder %s586_s29, %s586_s29 }
  0x14   :  { %p593_p8 = por %p592_p7, %p591_p6 }
  0x16   :  { %p594_p9 = pnand %p593_p8, %p587_p5 }
  0x18   :  { %597 = shalt.err (!%p594_p9)
}
  0x19   :  { %59 = dma.hbm_to_vmem [thread:$0]  %s805_s3, 2048, %s54_s26, [#allocation9], %s687_s21, %s687_s21, %s688_s22  }
  0x1a   :  { %s606_s1 = scalar_lea.vmem %s21_s28, 128  ;;  %p611_p11 = scmp.lt.s32.totalorder %s21_s28, %s21_s28 }
  0x1b   :  { %p607_p10 = scmp.ne.s32.totalorder %s21_s28, %s606_s1  ;;  %p612_p12 = scmp.lt.s32.totalorder %s606_s1, %s606_s1 }
  0x1d   :  { %p613_p13 = por %p612_p12, %p611_p11 }
  0x1f   :  { %p614_p0 = pnand %p613_p13, %p607_p10 }
  0x21   :  { %617 = shalt.err (!%p614_p0)
}
  0x22   :  { %23 = dma.hbm_to_vmem [thread:$0]  %s802_s0, 128, %s21_s28, [#allocation3]  }
  0x23   :  { %s691_s9 = smov [#allocation7]   ;;  %s692_s11 = smov [#allocation10]  }
  0x24   :  { %s41_s10 = sshll.u32 %s691_s9, 4  ;;  %s66_s12 = sshll.u32 %s692_s11, 4  ;;  %s42_s10 = int_to_ptr.vmem [resolvable:$true] %s41_s10  ;;  %s67_s12 = int_to_ptr.vmem [resolvable:$true] %s66_s12 }
  0x25   :  { %s626_s13 = scalar_lea.vmem %s42_s10, 2048  ;;  %p631_p2 = scmp.lt.s32.totalorder %s42_s10, %s42_s10 }
  0x26   :  { %p627_p1 = scmp.ne.s32.totalorder %s42_s10, %s626_s13  ;;  %p632_p3 = scmp.lt.s32.totalorder %s626_s13, %s626_s13 }
  0x28   :  { %p633_p4 = por %p632_p3, %p631_p2 }
  0x2a   :  { %p634_p5 = pnand %p633_p4, %p627_p1 }
  0x2c   :  { %637 = shalt.err (!%p634_p5)
}
  0x2d   :  { %47 = dma.hbm_to_vmem [thread:$0]  %s804_s2, 2048, %s42_s10, [#allocation6], %s687_s21, %s687_s21, %s688_s22  }
  0x2e   :  { %s646_s0 = scalar_lea.vmem %s67_s12, 128  ;;  %p651_p7 = scmp.lt.s32.totalorder %s67_s12, %s67_s12 }
  0x2f   :  { %p647_p6 = scmp.ne.s32.totalorder %s67_s12, %s646_s0  ;;  %p652_p8 = scmp.lt.s32.totalorder %s646_s0, %s646_s0 }
  0x31   :  { %p653_p9 = por %p652_p8, %p651_p7 }
  0x33   :  { %p654_p10 = pnand %p653_p9, %p647_p6 }
  0x35   :  { %657 = shalt.err (!%p654_p10)
}
  0x36   :  { %69 = dma.hbm_to_vmem [thread:$0]  %s806_s4, 128, %s67_s12, [#allocation9]  }
  0x37   :  { %678 = dma.done.wait [#allocation3], 128  }
  0x38   :  { %679 = vsyncadd [#allocation3], 4294967168 }
  0x39   :  { %680 = dma.done.wait [#allocation6], 2304  }
  0x3a   :  { %681 = vsyncadd [#allocation6], 4294964992 }
  0x3b   :  { %682 = dma.done.wait [#allocation9], 2176  }
  0x3c   :  { %683 = vsyncadd [#allocation9], 4294965120  ;;  %v693_v0 = vmov 0.0   ;;  %vm694_vm0 = vmmov 0   ;;  %v94_v1 = vld [vmem:[#allocation5 + $0x8] sm:$0xff]  ;;  %v93_v2 = vld [vmem:[#allocation5] sm:$0xff] }
  0x3d   :  { %465 = vmatprep.subr.mxu0 %v693_v0  ;;  %469 = vmatprep.mubr.msk.f32.mxu0 %vm694_vm0, %v693_v0  ;;  %v92_v3 = vld [vmem:[#allocation2] sm:$0xff]  ;;  %vm99_vm1 = vcmask 130048   ;;  %v420_v4 = vld [vmem:[#allocation10] ss:$0 sm:$0xff]  ;;  %v212_v9 = vld [vmem:[#allocation7 + $0x78] sm:$0xff]  ;;  %s695_s2 = smov [#allocation11]  }
  0x3e   :  { %472 = vmatprep.subr.mxu1 %v693_v0  ;;  %504 = vmatprep.mubr.msk.f32.mxu1 %vm694_vm0, %v693_v0  ;;  %v211_v10 = vld [vmem:[#allocation7 + $0x70] sm:$0xff]  ;;  %v210_v11 = vld [vmem:[#allocation7 + $0x68] sm:$0xff]  ;;  %v209_v12 = vld [vmem:[#allocation7 + $0x60] sm:$0xff]  ;;  %s409_s4 = sshll.u32 %s695_s2, 4  ;;  %s410_s4 = int_to_ptr.vmem [resolvable:$true] %s409_s4 }
  0x3f   :  { %466 = vmatpush3.msra.mxu0 %v94_v1  ;;  %473 = vmatpush3.msra.mxu1 %v212_v9  ;;  %v208_v13 = vld [vmem:[#allocation7 + $0x58] sm:$0xff]  ;;  %v207_v14 = vld [vmem:[#allocation7 + $0x50] sm:$0xff]  ;;  %v206_v15 = vld [vmem:[#allocation7 + $0x48] sm:$0xff]  ;;  %s658_s17 = scalar_lea.vmem %s410_s4, 128  ;;  %p663_p12 = scmp.lt.s32.totalorder %s410_s4, %s410_s4 }
  0x40   :  { %467 = vmatprep.subr.mxu0 %v693_v0  ;;  %474 = vmatprep.subr.mxu1 %v693_v0  ;;  %v205_v16 = vld [vmem:[#allocation7 + $0x40] sm:$0xff]  ;;  %v204_v17 = vld [vmem:[#allocation7 + $0x38] sm:$0xff]  ;;  %v203_v18 = vld [vmem:[#allocation7 + $0x30] sm:$0xff]  ;;  %p659_p11 = scmp.ne.s32.totalorder %s410_s4, %s658_s17  ;;  %p664_p13 = scmp.lt.s32.totalorder %s658_s17, %s658_s17 }
  0x41   :  { %468 = vmatpush3.msra.mxu0 %v93_v2  ;;  %475 = vmatpush3.msra.mxu1 %v211_v10  ;;  %v202_v19 = vld [vmem:[#allocation7 + $0x28] sm:$0xff]  ;;  %v201_v20 = vld [vmem:[#allocation7 + $0x20] sm:$0xff]  ;;  %v200_v21 = vld [vmem:[#allocation7 + $0x18] sm:$0xff] }
  0x42   :  { %470 = vmatmul.mubr.msk.f32.vlgmr.msra.gmra.mxu0 %vm99_vm1, %v92_v3  ;;  %507 = vmatprep.subr.mxu0 %v693_v0  ;;  %v199_v22 = vld [vmem:[#allocation7 + $0x10] sm:$0xff]  ;;  %v198_v23 = vld [vmem:[#allocation7 + $0x8] sm:$0xff]  ;;  %v197_v24 = vld [vmem:[#allocation7] sm:$0xff]  ;;  %p665_p0 = por %p664_p13, %p663_p12 }
  0x43   :  { %539 = vmatprep.mubr.msk.f32.mxu0 %vm694_vm0, %v693_v0  ;;  %476 = vmatprep.subr.mxu1 %v693_v0  ;;  %v422_v34 = vld [vmem:[#allocation10 + $0x1] ss:$0 sm:$0xff]  ;;  %v423_v36 = vld [vmem:[#allocation10 + $0x2] ss:$0 sm:$0xff]  ;;  %v424_v40 = vld [vmem:[#allocation10 + $0x3] ss:$0 sm:$0xff] }
  0x44   :  { %477 = vmatpush3.msra.mxu1 %v210_v11  ;;  %v326_v45 = vld [vmem:[#allocation8 + $0x78] sm:$0xff]  ;;  %v325_v46 = vld [vmem:[#allocation8 + $0x70] sm:$0xff]  ;;  %v324_v47 = vld [vmem:[#allocation8 + $0x68] sm:$0xff]  ;;  %p666_p1 = pnand %p665_p0, %p659_p11 }
  0x45   :  { %478 = vmatprep.subr.mxu1 %v693_v0  ;;  %508 = vmatpush3.msra.mxu0 %v326_v45  ;;  %v323_v48 = vld [vmem:[#allocation8 + $0x60] sm:$0xff]  ;;  %v322_v49 = vld [vmem:[#allocation8 + $0x58] sm:$0xff]  ;;  %v321_v50 = vld [vmem:[#allocation8 + $0x50] sm:$0xff] }
  0x46   :  { %479 = vmatpush3.msra.mxu1 %v209_v12  ;;  %509 = vmatprep.subr.mxu0 %v693_v0  ;;  %v320_v51 = vld [vmem:[#allocation8 + $0x48] sm:$0xff]  ;;  %v319_v52 = vld [vmem:[#allocation8 + $0x40] sm:$0xff]  ;;  %v318_v53 = vld [vmem:[#allocation8 + $0x38] sm:$0xff] }
  0x47   :  { %480 = vmatprep.subr.mxu1 %v693_v0  ;;  %510 = vmatpush3.msra.mxu0 %v325_v46  ;;  %v317_v54 = vld [vmem:[#allocation8 + $0x30] sm:$0xff]  ;;  %v316_v55 = vld [vmem:[#allocation8 + $0x28] sm:$0xff]  ;;  %v315_v56 = vld [vmem:[#allocation8 + $0x20] sm:$0xff] }
  0x48   :  { %481 = vmatpush3.msra.mxu1 %v208_v13  ;;  %511 = vmatprep.subr.mxu0 %v693_v0  ;;  %v314_v57 = vld [vmem:[#allocation8 + $0x18] sm:$0xff]  ;;  %v313_v58 = vld [vmem:[#allocation8 + $0x10] sm:$0xff]  ;;  %v312_v59 = vld [vmem:[#allocation8 + $0x8] sm:$0xff] }
  0x49   :  { %482 = vmatprep.subr.mxu1 %v693_v0  ;;  %512 = vmatpush3.msra.mxu0 %v324_v47  ;;  %v311_v60 = vld [vmem:[#allocation8] sm:$0xff] }
  0x4a   :  { %483 = vmatpush3.msra.mxu1 %v207_v14  ;;  %513 = vmatprep.subr.mxu0 %v693_v0  ;;  %v426_v9 = vld [vmem:[#allocation10 + $0x5] ss:$0 sm:$0xff] }
  0x4b   :  { %484 = vmatprep.subr.mxu1 %v693_v0  ;;  %514 = vmatpush3.msra.mxu0 %v323_v48 }
  0x4c   :  { %485 = vmatpush3.msra.mxu1 %v206_v15  ;;  %515 = vmatprep.subr.mxu0 %v693_v0 }
  0x4d   :  { %486 = vmatprep.subr.mxu1 %v693_v0  ;;  %516 = vmatpush3.msra.mxu0 %v322_v49 }
  0x4e   :  { %487 = vmatpush3.msra.mxu1 %v205_v16  ;;  %517 = vmatprep.subr.mxu0 %v693_v0 }
  0x4f   :  { %488 = vmatprep.subr.mxu1 %v693_v0  ;;  %518 = vmatpush3.msra.mxu0 %v321_v50 }
  0x50   :  { %489 = vmatpush3.msra.mxu1 %v204_v17  ;;  %519 = vmatprep.subr.mxu0 %v693_v0 }
  0x51   :  { %490 = vmatprep.subr.mxu1 %v693_v0  ;;  %520 = vmatpush3.msra.mxu0 %v320_v51 }
  0x52   :  { %491 = vmatpush3.msra.mxu1 %v203_v18  ;;  %521 = vmatprep.subr.mxu0 %v693_v0 }
  0x53   :  { %492 = vmatprep.subr.mxu1 %v693_v0  ;;  %522 = vmatpush3.msra.mxu0 %v319_v52 }
  0x54   :  { %493 = vmatpush3.msra.mxu1 %v202_v19  ;;  %523 = vmatprep.subr.mxu0 %v693_v0 }
  0x55   :  { %494 = vmatprep.subr.mxu1 %v693_v0  ;;  %524 = vmatpush3.msra.mxu0 %v318_v53 }
  0x56   :  { %495 = vmatpush3.msra.mxu1 %v201_v20  ;;  %525 = vmatprep.subr.mxu0 %v693_v0 }
  0x57   :  { %496 = vmatprep.subr.mxu1 %v693_v0  ;;  %526 = vmatpush3.msra.mxu0 %v317_v54 }
  0x58   :  { %497 = vmatpush3.msra.mxu1 %v200_v21  ;;  %527 = vmatprep.subr.mxu0 %v693_v0 }
  0x59   :  { %498 = vmatprep.subr.mxu1 %v693_v0  ;;  %528 = vmatpush3.msra.mxu0 %v316_v55 }
  0x5a   :  { %499 = vmatpush3.msra.mxu1 %v199_v22  ;;  %529 = vmatprep.subr.mxu0 %v693_v0 }
  0x5b   :  { %500 = vmatprep.subr.mxu1 %v693_v0  ;;  %530 = vmatpush3.msra.mxu0 %v315_v56 }
  0x5c   :  { %501 = vmatpush3.msra.mxu1 %v198_v23  ;;  %531 = vmatprep.subr.mxu0 %v693_v0 }
  0x5d   :  { %502 = vmatprep.subr.mxu1 %v693_v0  ;;  %532 = vmatpush3.msra.mxu0 %v314_v57 }
  0x5e   :  { %503 = vmatpush3.msra.mxu1 %v197_v24  ;;  %533 = vmatprep.subr.mxu0 %v693_v0 }
  0x5f   :  { %534 = vmatpush3.msra.mxu0 %v313_v58 }
  0x60   :  { %535 = vmatprep.subr.mxu0 %v693_v0 }
  0x61   :  { %536 = vmatpush3.msra.mxu0 %v312_v59 }
  0x62   :  { %537 = vmatprep.subr.mxu0 %v693_v0  ;;  %v427_v0 = vld [vmem:[#allocation10 + $0x6] ss:$0 sm:$0xff] }
  0x63   :  { %538 = vmatpush3.msra.mxu0 %v311_v60 }
 0x102   :  { %v169_v5 = vpop.f32.mrf.mxu0 }
 0x103   :  { %v757_v6 = vadd.f32 %v420_v4, %v169_v5 }
 0x104   :  { %v471_v7 = vpop.f32.mrf.mxu0 }
 0x105   :  { %173 = vadd.xlane.f32.xlu0 %v757_v6  ;;  %v176_v8 = vmul.f32 %v757_v6, %v757_v6  ;;  %v425_v7 = vld [vmem:[#allocation10 + $0x4] ss:$0 sm:$0xff] }
 0x109   :  { %177 = vadd.xlane.f32.xlu0 %v176_v8 }
 0x18e   :  { %v174_v25 = vpop.xlane.xlu0 %173 }
 0x18f   :  { %v175_v26 = vmul.f32 0.03125, %v174_v25 }
 0x191   :  { %v180_v28 = vmul.f32 %v175_v26, %v175_v26  ;;  %v182_v32 = vsub.f32 %v757_v6, %v175_v26 }
 0x192   :  { %v178_v27 = vpop.xlane.xlu0 %177 }
 0x193   :  { %v179_v29 = vmul.f32 0.03125, %v178_v27 }
 0x195   :  { %v181_v30 = vsub.f32 %v179_v29, %v180_v28 }
 0x197   :  { %v183_v31 = vadd.f32 1e-05, %v181_v30 }
 0x199   :  { %552 = vrsqrt.f32 %v183_v31 }
 0x1a6   :  { %v553_v33 = vpop.eup %552 }
 0x1a7   :  { %v185_v35 = vmul.f32 %v553_v33, %v182_v32 }
 0x1a9   :  { %v190_v37 = vmul.f32 %v422_v34, %v185_v35 }
 0x1ab   :  { %v195_v38 = vadd.f32 %v423_v36, %v190_v37 }
 0x1ad   :  { %v196_v39 = vmax.f32 %v195_v38, 0.0 }
 0x1af   :  { %505 = vmatmul.mubr.f32.vlgmr.msra.gmra.mxu1 %v196_v39 }
 0x26f   :  { %v283_v41 = vpop.f32.mrf.mxu1 }
 0x270   :  { %v778_v42 = vadd.f32 %v424_v40, %v283_v41 }
 0x271   :  { %v506_v43 = vpop.f32.mrf.mxu1 }
 0x272   :  { %287 = vadd.xlane.f32.xlu1 %v778_v42  ;;  %v290_v44 = vmul.f32 %v778_v42, %v778_v42 }
 0x276   :  { %291 = vadd.xlane.f32.xlu1 %v290_v44 }
 0x2fb   :  { %v288_v61 = vpop.xlane.xlu1 %287 }
 0x2fc   :  { %v289_v62 = vmul.f32 0.03125, %v288_v61 }
 0x2fe   :  { %v294_v1 = vmul.f32 %v289_v62, %v289_v62  ;;  %v296_v5 = vsub.f32 %v778_v42, %v289_v62 }
 0x2ff   :  { %v292_v63 = vpop.xlane.xlu1 %291 }
 0x300   :  { %v293_v2 = vmul.f32 0.03125, %v292_v63 }
 0x302   :  { %v295_v3 = vsub.f32 %v293_v2, %v294_v1 }
 0x304   :  { %v297_v4 = vadd.f32 1e-05, %v295_v3 }
 0x306   :  { %554 = vrsqrt.f32 %v297_v4 }
 0x313   :  { %v555_v6 = vpop.eup %554 }
 0x314   :  { %v299_v8 = vmul.f32 %v555_v6, %v296_v5 }
 0x316   :  { %v304_v10 = vmul.f32 %v425_v7, %v299_v8 }
 0x318   :  { %v309_v11 = vadd.f32 %v426_v9, %v304_v10 }
 0x31a   :  { %v310_v12 = vmax.f32 %v309_v11, 0.0 }
 0x31c   :  { %540 = vmatmul.mubr.f32.vlgmr.msra.gmra.mxu0 %v310_v12 }
 0x3dc   :  { %v397_v13 = vpop.f32.mrf.mxu0 }
 0x3dd   :  { %v398_v14 = vadd.f32 %v427_v0, %v397_v13 }
 0x3de   :  { %v541_v15 = vpop.f32.mrf.mxu0 }
 0x3df   :  { %556 = vtanh.f32 %v398_v14 }
 0x3ec   :  { %v557_v16 = vpop.eup %556 }
 0x3ed   :  { %402 = vst [vmem:[#allocation11] sm:$0xff] %v557_v16 }
 0x3ee   :  { %669 = shalt.err (!%p666_p1)
}
 0x3ef   :  { %412 = dma.vmem_to_hbm [thread:$0]  %s410_s4, 128, %s807_s5, [#allocation4]  }
 0x3f0   :  { %684 = dma.done.wait [#allocation4], 128  }
 0x3f1   :  { %685 = vsyncadd [#allocation4], 4294967168 }
 0x3f2   :  { %416 = vsyncpa [#allocation3], 1 }
 0x3f3   :  { %417 = vsyncpa [#allocation6], 1 }
 0x3f4   :  { %418 = vsyncpa [#allocation9], 1 }
 0x3f5   :  { %419 = vsyncpa [#allocation4], 1 }

</bundles_post_ra>
